<compile_context>
chip_gen: v6e
topology: v6e:2x2x1
jax: 0.10.0
libtpu: 0.0.40
codegen_flags: <defaults>
</compile_context>

<pallas_src>
import functools

import jax
import jax.numpy as jnp
from jax import lax
from jax.experimental import pallas as pl
from jax.experimental.pallas import tpu as pltpu

# Explicit scoped-VMEM budget: <= physical on v7x (64 MiB), well under v5e/v6e
# (128 MiB), and comfortably above every per-step working set used below.
_VMEM_LIMIT_BYTES = 32 * 1024 * 1024


# ----------------------------------------------------------------------------
# Tiling helpers (no silent full-extent fallback for large dims)
# ----------------------------------------------------------------------------
def _round_up(x, m):
    return ((x + m - 1) // m) * m


def _pick_div_tile(dim, pref):
    """Tile that divides `dim` exactly (weight / lane dimensions)."""
    if dim <= pref:
        return dim
    for t in (pref, pref // 2, 128):
        if dim % t == 0:
            return t
    if dim <= 2048:                      # unusual d_model: bounded full extent
        return dim
    raise ValueError(f"dimension {dim} > 2048 must be a multiple of 128")


def _row_tile(m, pref):
    return m if m <= pref else pref


def _pad_rows(x, tile):
    pm = _round_up(x.shape[0], tile)
    if pm == x.shape[0]:
        return x
    return jnp.pad(x, ((0, pm - x.shape[0]), (0, 0)))


def _seq_tile(s, pref):
    if s <= pref:
        return s
    for t in (pref, 256, 128):
        if s % t == 0:
            return t
    # TODO(synk): pad + mask key/query tails for seq lengths that are not a
    #             multiple of 128 (needs a masked softmax); not required here.
    raise ValueError(f"sequence length {s} > {pref} must be a multiple of 128")


# ----------------------------------------------------------------------------
# Kernel 1a: fused Q/K/V projections (cross-attention path, 3 streams, 1 launch)
# ----------------------------------------------------------------------------
def _qkv_proj_kernel(q_ref, k_ref, v_ref, wq_ref, wk_ref, wv_ref,
                     qo_ref, ko_ref, vo_ref, qacc, kacc, vacc):
    @pl.when(pl.program_id(2) == 0)
    def _():
        qacc[...] = jnp.zeros_like(qacc)
        kacc[...] = jnp.zeros_like(kacc)
        vacc[...] = jnp.zeros_like(vacc)

    qacc[...] += jnp.dot(q_ref[...], wq_ref[...],
                         preferred_element_type=jnp.float32)
    kacc[...] += jnp.dot(k_ref[...], wk_ref[...],
                         preferred_element_type=jnp.float32)
    vacc[...] += jnp.dot(v_ref[...], wv_ref[...],
                         preferred_element_type=jnp.float32)

    @pl.when(pl.program_id(2) == pl.num_programs(2) - 1)
    def _():
        qo_ref[...] = qacc[...].astype(qo_ref.dtype)
        ko_ref[...] = kacc[...].astype(ko_ref.dtype)
        vo_ref[...] = vacc[...].astype(vo_ref.dtype)


def qkv_projection(q2d, k2d, v2d, wq_t, wk_t, wv_t, *, tm=512, tn=512, tk=512):
    """q2d/k2d/v2d: (M, D) bf16; w*_t: (D, D) bf16 -> three (M, D) bf16."""
    M, K = q2d.shape
    N = wq_t.shape[1]
    tn = _pick_div_tile(N, tn)
    tk = _pick_div_tile(K, tk)
    tm = _row_tile(M, tm)
    q2d, k2d, v2d = (_pad_rows(x, tm) for x in (q2d, k2d, v2d))
    Mp = q2d.shape[0]
    grid = (Mp // tm, N // tn, K // tk)

    x_spec = pl.BlockSpec((tm, tk), lambda i, j, k: (i, k))
    w_spec = pl.BlockSpec((tk, tn), lambda i, j, k: (k, j))
    o_spec = pl.BlockSpec((tm, tn), lambda i, j, k: (i, j))
    out_sds = jax.ShapeDtypeStruct((Mp, N), jnp.bfloat16)

    qo, ko, vo = pl.pallas_call(
        _qkv_proj_kernel,
        out_shape=(out_sds, out_sds, out_sds),
        grid_spec=pltpu.PrefetchScalarGridSpec(
            num_scalar_prefetch=0,
            grid=grid,
            in_specs=[x_spec, x_spec, x_spec, w_spec, w_spec, w_spec],
            out_specs=[o_spec, o_spec, o_spec],
            scratch_shapes=[pltpu.VMEM((tm, tn), jnp.float32)
                            for _ in range(3)]),
        compiler_params=pltpu.CompilerParams(
            dimension_semantics=("parallel", "parallel", "arbitrary"),
            vmem_limit_bytes=_VMEM_LIMIT_BYTES),
    )(q2d, k2d, v2d, wq_t, wk_t, wv_t)
    return qo[:M], ko[:M], vo[:M]


# ----------------------------------------------------------------------------
# Kernel 1b: single-stream matmul (self-attention path with (D, 3D) QKV weight)
# ----------------------------------------------------------------------------
def _matmul_kernel(x_ref, w_ref, o_ref, acc_ref):
    @pl.when(pl.program_id(2) == 0)
    def _():
        acc_ref[...] = jnp.zeros_like(acc_ref)

    acc_ref[...] += jnp.dot(x_ref[...], w_ref[...],
                            preferred_element_type=jnp.float32)

    @pl.when(pl.program_id(2) == pl.num_programs(2) - 1)
    def _():
        o_ref[...] = acc_ref[...].astype(o_ref.dtype)


def matmul_bf16(x2d, w_t, *, tm=512, tn=512, tk=512):
    """x2d: (M, K) bf16, w_t: (K, N) bf16 -> (M, N) bf16."""
    M, K = x2d.shape
    N = w_t.shape[1]
    tn = _pick_div_tile(N, tn)
    tk = _pick_div_tile(K, tk)
    tm = _row_tile(M, tm)
    xp = _pad_rows(x2d, tm)
    Mp = xp.shape[0]
    grid = (Mp // tm, N // tn, K // tk)

    out = pl.pallas_call(
        _matmul_kernel,
        out_shape=jax.ShapeDtypeStruct((Mp, N), jnp.bfloat16),
        grid_spec=pltpu.PrefetchScalarGridSpec(
            num_scalar_prefetch=0,
            grid=grid,
            in_specs=[pl.BlockSpec((tm, tk), lambda i, j, k: (i, k)),
                      pl.BlockSpec((tk, tn), lambda i, j, k: (k, j))],
            out_specs=pl.BlockSpec((tm, tn), lambda i, j, k: (i, j)),
            scratch_shapes=[pltpu.VMEM((tm, tn), jnp.float32)]),
        compiler_params=pltpu.CompilerParams(
            dimension_semantics=("parallel", "parallel", "arbitrary"),
            vmem_limit_bytes=_VMEM_LIMIT_BYTES),
    )(xp, w_t)
    return out[:M]


# ----------------------------------------------------------------------------
# Kernel 2: KV-tiled online-softmax (flash) attention.
#   q: (B,H,S,d_k) (already scaled by 1/sqrt(d_k) via Wq), kT: (B,H,d_k,S),
#   v: (B,H,S,d_k) -> ctx (B,H,S,d_k) bf16.
# ----------------------------------------------------------------------------
def _flash_attn_kernel(q_ref, kt_ref, v_ref, o_ref, m_sc, l_sc, acc_sc):
    kv = pl.program_id(3)

    @pl.when(kv == 0)
    def _():
        m_sc[...] = jnp.full(m_sc.shape, -jnp.inf, dtype=m_sc.dtype)
        l_sc[...] = jnp.zeros_like(l_sc)
        acc_sc[...] = jnp.zeros_like(acc_sc)

    q = q_ref[...]                       # (tq, d_k)  bf16
    kt = kt_ref[...]                     # (d_k, tkv) bf16 (K already transposed)
    v = v_ref[...]                       # (tkv, d_k) bf16

    # NOTE: d_k < 128 underfills the MXU contraction depth; inherent to
    # per-head attention at small d_k.
    s = jnp.dot(q, kt, preferred_element_type=jnp.float32)        # (tq, tkv)

    m_prev = m_sc[...]
    m_new = jnp.maximum(m_prev, jnp.max(s, axis=-1, keepdims=True))
    alpha = jnp.exp(m_prev - m_new)
    p = jnp.exp(s - m_new)                                         # unnormalized
    l_sc[...] = alpha * l_sc[...] + jnp.sum(p, axis=-1, keepdims=True)
    acc_sc[...] = alpha * acc_sc[...] + jnp.dot(
        p.astype(v.dtype), v, preferred_element_type=jnp.float32)
    m_sc[...] = m_new

    @pl.when(kv == pl.num_programs(3) - 1)
    def _():
        # deferred normalization: one (tq, d_k) scale instead of (tq, tkv)
        inv_l = pl.reciprocal(l_sc[...], approx=True)              # EUP slot
        o_ref[...] = (acc_sc[...] * inv_l).astype(o_ref.dtype)


def flash_attention(qh, kth, vh, *, tq=256, tkv=512):
    B, H, S, d_k = qh.shape
    tq = _seq_tile(S, tq)
    tkv = _seq_tile(S, tkv)
    grid = (B, H, S // tq, S // tkv)      # kv-reduction axis last

    q_spec = pl.BlockSpec((None, None, tq, d_k), lambda b, h, qi, ki: (b, h, qi, 0))
    kt_spec = pl.BlockSpec((None, None, d_k, tkv), lambda b, h, qi, ki: (b, h, 0, ki))
    v_spec = pl.BlockSpec((None, None, tkv, d_k), lambda b, h, qi, ki: (b, h, ki, 0))
    o_spec = pl.BlockSpec((None, None, tq, d_k), lambda b, h, qi, ki: (b, h, qi, 0))

    return pl.pallas_call(
        _flash_attn_kernel,
        out_shape=jax.ShapeDtypeStruct((B, H, S, d_k), jnp.bfloat16),
        grid_spec=pltpu.PrefetchScalarGridSpec(
            num_scalar_prefetch=0,
            grid=grid,
            in_specs=[q_spec, kt_spec, v_spec],
            out_specs=o_spec,
            scratch_shapes=[pltpu.VMEM((tq, 1), jnp.float32),
                            pltpu.VMEM((tq, 1), jnp.float32),
                            pltpu.VMEM((tq, d_k), jnp.float32)]),
        compiler_params=pltpu.CompilerParams(
            dimension_semantics=("parallel", "parallel", "parallel", "arbitrary"),
            vmem_limit_bytes=_VMEM_LIMIT_BYTES),
    )(qh, kth, vh)


# ----------------------------------------------------------------------------
# Kernel 3: output projection + residual + LayerNorm (row-tiled epilogue)
# ----------------------------------------------------------------------------
def _out_proj_ln_kernel(x_ref, wo_ref, g_ref, b_ref, o_ref, *, eps):
    x = x_ref[...]                                    # (tm, D) bf16 context
    y = jnp.dot(x, wo_ref[...], preferred_element_type=jnp.float32) \
        + x.astype(jnp.float32)                       # residual on attention output

    # one-pass LayerNorm statistics (sum + sum-of-squares), reuse (y - mean)
    d = y.shape[-1]
    inv_d = 1.0 / d
    mean = jnp.sum(y, axis=-1, keepdims=True) * inv_d
    mean_sq = jnp.sum(y * y, axis=-1, keepdims=True) * inv_d
    var = jnp.maximum(mean_sq - mean * mean, 0.0)
    centered = y - mean
    norm = centered * lax.rsqrt(var + eps)
    o_ref[...] = (norm * g_ref[...] + b_ref[...]).astype(o_ref.dtype)


def output_projection_layernorm(ctx2d, wo_t, gamma, beta, *, eps, tm=256):
    # TODO(synk): for very large d_model (> ~2048) the resident (D,D) weight
    #             would need a K-tiled accumulation; not needed at these sizes.
    M, D = ctx2d.shape
    tm = _row_tile(M, tm)
    xp = _pad_rows(ctx2d, tm)
    Mp = xp.shape[0]

    out = pl.pallas_call(
        functools.partial(_out_proj_ln_kernel, eps=eps),
        out_shape=jax.ShapeDtypeStruct((Mp, D), jnp.float32),
        grid_spec=pltpu.PrefetchScalarGridSpec(
            num_scalar_prefetch=0,
            grid=(Mp // tm,),
            in_specs=[pl.BlockSpec((tm, D), lambda i: (i, 0)),
                      pl.BlockSpec((D, D), lambda i: (0, 0)),
                      pl.BlockSpec((1, D), lambda i: (0, 0)),
                      pl.BlockSpec((1, D), lambda i: (0, 0))],
            out_specs=pl.BlockSpec((tm, D), lambda i: (i, 0))),
        compiler_params=pltpu.CompilerParams(
            dimension_semantics=("parallel",),
            vmem_limit_bytes=_VMEM_LIMIT_BYTES),
    )(xp, wo_t, gamma, beta)
    return out[:M]


# ----------------------------------------------------------------------------
# Parameter handling (weight prep hoisted out of the forward pass)
# ----------------------------------------------------------------------------
def init_params(key, d_model):
    ks = jax.random.split(key, 4)
    bound = 1.0 / float(d_model) ** 0.5      # nn.Linear default init range
    mk = lambda k: jax.random.uniform(k, (d_model, d_model), jnp.float32,
                                      -bound, bound)
    return {
        "wq": mk(ks[0]), "wk": mk(ks[1]), "wv": mk(ks[2]), "wo": mk(ks[3]),
        "gamma": jnp.ones((d_model,), jnp.float32),     # LayerNorm defaults
        "beta": jnp.zeros((d_model,), jnp.float32),
    }


def prepare_params(params, num_heads):
    """One-time prep: transpose to (in,out), fold 1/sqrt(d_k) into Wq, cast bf16."""
    D = params["wq"].shape[0]
    d_k = D // num_heads
    scale = 1.0 / float(d_k) ** 0.5
    wq_t = (params["wq"] * scale).T.astype(jnp.bfloat16)
    wk_t = params["wk"].T.astype(jnp.bfloat16)
    wv_t = params["wv"].T.astype(jnp.bfloat16)
    return {
        "wq_t": wq_t, "wk_t": wk_t, "wv_t": wv_t,
        "wqkv_t": jnp.concatenate([wq_t, wk_t, wv_t], axis=1),   # (D, 3D)
        "wo_t": params["wo"].T.astype(jnp.bfloat16),
        "gamma": params["gamma"].astype(jnp.float32).reshape(1, D),
        "beta": params["beta"].astype(jnp.float32).reshape(1, D),
    }


# ----------------------------------------------------------------------------
# Full MultiHeadAttention forward
# ----------------------------------------------------------------------------
def multi_head_attention(query, key, value, prep, num_heads, eps=1e-5):
    assert query.shape == key.shape == value.shape
    B, S, D = query.shape
    assert D % num_heads == 0
    d_k = D // num_heads
    M = B * S

    if (query is key) and (key is value):
        # self-attention: one activation stream, one (D, 3D) weight
        x2d = query.reshape(M, D).astype(jnp.bfloat16)
        qkv = matmul_bf16(x2d, prep["wqkv_t"])                     # (M, 3D)
        qp, kp, vp = qkv[:, :D], qkv[:, D:2 * D], qkv[:, 2 * D:]
    else:
        q2d = query.reshape(M, D).astype(jnp.bfloat16)
        k2d = key.reshape(M, D).astype(jnp.bfloat16)
        v2d = value.reshape(M, D).astype(jnp.bfloat16)
        qp, kp, vp = qkv_projection(q2d, k2d, v2d,
                                    prep["wq_t"], prep["wk_t"], prep["wv_t"])

    # head split done via layout (BlockSpec/DMA selects head blocks), and K is
    # pre-transposed so the kernel's QK^T needs no in-kernel transpose.
    qh = qp.reshape(B, S, num_heads, d_k).transpose(0, 2, 1, 3)    # (B,H,S,dk)
    kth = kp.reshape(B, S, num_heads, d_k).transpose(0, 2, 3, 1)   # (B,H,dk,S)
    vh = vp.reshape(B, S, num_heads, d_k).transpose(0, 2, 1, 3)    # (B,H,S,dk)

    ctx = flash_attention(qh, kth, vh)                             # bf16
    ctx2d = ctx.transpose(0, 2, 1, 3).reshape(M, D)                # (M, D) bf16

    out2d = output_projection_layernorm(ctx2d, prep["wo_t"],
                                        prep["gamma"], prep["beta"], eps=eps)
    return out2d.reshape(B, S, D)


# ----------------------------------------------------------------------------
# Pure-JAX f32 reference (mirrors the PyTorch module, eval mode, no mask)
# ----------------------------------------------------------------------------
def reference_mha(query, key, value, params, num_heads, eps=1e-5):
    B, S, D = query.shape
    d_k = D // num_heads
    proj = lambda x, w: x @ w.T
    q = proj(query, params["wq"]).reshape(B, S, num_heads, d_k).transpose(0, 2, 1, 3)
    k = proj(key, params["wk"]).reshape(B, S, num_heads, d_k).transpose(0, 2, 1, 3)
    v = proj(value, params["wv"]).reshape(B, S, num_heads, d_k).transpose(0, 2, 1, 3)
    s = jnp.einsum("bhqd,bhkd->bhqk", q, k) / jnp.sqrt(jnp.float32(d_k))
    p = jax.nn.softmax(s, axis=-1)
    x = jnp.einsum("bhqk,bhkd->bhqd", p, v).transpose(0, 2, 1, 3).reshape(B, S, D)
    y = x @ params["wo"].T + x
    mean = y.mean(-1, keepdims=True)
    var = ((y - mean) ** 2).mean(-1, keepdims=True)
    return ((y - mean) / jnp.sqrt(var + eps)) * params["gamma"].reshape(1, 1, D) \
        + params["beta"].reshape(1, 1, D)


if __name__ == "__main__":
    batch, seq, d_model, num_heads = 2, 8, 32, 4

    root = jax.random.PRNGKey(0)
    k_p, k_q, k_k, k_v = jax.random.split(root, 4)
    params = init_params(k_p, d_model)
    prep = prepare_params(params, num_heads)      # one-time weight prep

    q = jax.random.normal(k_q, (batch, seq, d_model), jnp.float32)
    k = jax.random.normal(k_k, (batch, seq, d_model), jnp.float32)
    v = jax.random.normal(k_v, (batch, seq, d_model), jnp.float32)

    # cross-attention path (3-stream fused QKV projection)
    out = multi_head_attention(q, k, v, prep, num_heads)
    jax.block_until_ready(out)
    assert out.shape == (batch, seq, d_model)

    # self-attention path ((D, 3D) concatenated QKV weight)
    out_self = multi_head_attention(q, q, q, prep, num_heads)
    jax.block_until_ready(out_self)

    # loose-tolerance check vs pure-f32 reference (bf16 matmuls + approx recip)
    ref = reference_mha(q, k, v, params, num_heads)
    ref_self = reference_mha(q, q, q, params, num_heads)
    err = float(jnp.max(jnp.abs(out - ref)))
    err_self = float(jnp.max(jnp.abs(out_self - ref_self)))
    assert err < 0.1, f"cross-attention max abs error {err}"
    assert err_self < 0.1, f"self-attention max abs error {err_self}"

    print("KERNEL_OK")
</pallas_src>

<mosaic_0001>
module attributes {stable_mosaic.version = 11 : i64} {
  func.func @_qkv_proj_kernel(%arg0: i32, %arg1: i32, %arg2: i32, %arg3: memref<16x32xbf16, #tpu.memory_space<vmem>>, %arg4: memref<16x32xbf16, #tpu.memory_space<vmem>>, %arg5: memref<16x32xbf16, #tpu.memory_space<vmem>>, %arg6: memref<32x32xbf16, #tpu.memory_space<vmem>>, %arg7: memref<32x32xbf16, #tpu.memory_space<vmem>>, %arg8: memref<32x32xbf16, #tpu.memory_space<vmem>>, %arg9: memref<16x32xbf16, #tpu.memory_space<vmem>>, %arg10: memref<16x32xbf16, #tpu.memory_space<vmem>>, %arg11: memref<16x32xbf16, #tpu.memory_space<vmem>>, %arg12: memref<16x32xf32, #tpu.memory_space<vmem>>, %arg13: memref<16x32xf32, #tpu.memory_space<vmem>>, %arg14: memref<16x32xf32, #tpu.memory_space<vmem>>) attributes {dimension_semantics = [#tpu.dimension_semantics<parallel>, #tpu.dimension_semantics<parallel>, #tpu.dimension_semantics<arbitrary>], iteration_bounds = array<i64: 1, 1, 1>, scalar_prefetch = 0 : i64, scratch_operands = 3 : i64, tpu.core_type = #tpu.core_type<tc>, window_params = [{transform_indices = @transform_0, window_bounds = array<i64: 16, 32>}, {transform_indices = @transform_1, window_bounds = array<i64: 16, 32>}, {transform_indices = @transform_2, window_bounds = array<i64: 16, 32>}, {transform_indices = @transform_3, window_bounds = array<i64: 32, 32>}, {transform_indices = @transform_4, window_bounds = array<i64: 32, 32>}, {transform_indices = @transform_5, window_bounds = array<i64: 32, 32>}, {transform_indices = @transform_6, window_bounds = array<i64: 16, 32>}, {transform_indices = @transform_7, window_bounds = array<i64: 16, 32>}, {transform_indices = @transform_8, window_bounds = array<i64: 16, 32>}]} {
    %c0_i32 = arith.constant 0 : i32
    %0 = arith.cmpi eq, %arg2, %c0_i32 : i32
    %1 = arith.extui %0 : i1 to i32
    %c0_i32_0 = arith.constant 0 : i32
    %2 = arith.cmpi ne, %1, %c0_i32_0 : i32
    scf.if %2 {
      %cst_28 = arith.constant 0.000000e+00 : f32
      %24 = vector.broadcast %cst_28 : f32 to vector<16x32xf32>
      %c0_29 = arith.constant 0 : index
      %c0_30 = arith.constant 0 : index
      %25 = vector.load %arg12[%c0_29, %c0_30] : memref<16x32xf32, #tpu.memory_space<vmem>>, vector<16x32xf32>
      tpu.vector_store %arg12[%c0_29, %c0_30], %24 {strides = array<i32>} : memref<16x32xf32, #tpu.memory_space<vmem>>, vector<16x32xf32>,
      %cst_31 = arith.constant 0.000000e+00 : f32
      %26 = vector.broadcast %cst_31 : f32 to vector<16x32xf32>
      %c0_32 = arith.constant 0 : index
      %c0_33 = arith.constant 0 : index
      %27 = vector.load %arg13[%c0_32, %c0_33] : memref<16x32xf32, #tpu.memory_space<vmem>>, vector<16x32xf32>
      tpu.vector_store %arg13[%c0_32, %c0_33], %26 {strides = array<i32>} : memref<16x32xf32, #tpu.memory_space<vmem>>, vector<16x32xf32>,
      %cst_34 = arith.constant 0.000000e+00 : f32
      %28 = vector.broadcast %cst_34 : f32 to vector<16x32xf32>
      %c0_35 = arith.constant 0 : index
      %c0_36 = arith.constant 0 : index
      %29 = vector.load %arg14[%c0_35, %c0_36] : memref<16x32xf32, #tpu.memory_space<vmem>>, vector<16x32xf32>
      tpu.vector_store %arg14[%c0_35, %c0_36], %28 {strides = array<i32>} : memref<16x32xf32, #tpu.memory_space<vmem>>, vector<16x32xf32>,
    } else {
    }
    %c0 = arith.constant 0 : index
    %c0_1 = arith.constant 0 : index
    %3 = vector.load %arg12[%c0, %c0_1] : memref<16x32xf32, #tpu.memory_space<vmem>>, vector<16x32xf32>
    %c0_2 = arith.constant 0 : index
    %c0_3 = arith.constant 0 : index
    %4 = vector.load %arg3[%c0_2, %c0_3] : memref<16x32xbf16, #tpu.memory_space<vmem>>, vector<16x32xbf16>
    %c0_4 = arith.constant 0 : index
    %c0_5 = arith.constant 0 : index
    %5 = vector.load %arg6[%c0_4, %c0_5] : memref<32x32xbf16, #tpu.memory_space<vmem>>, vector<32x32xbf16>
    %cst = arith.constant dense<0.000000e+00> : vector<16x32xf32>
    %6 = tpu.matmul %4, %5, %cst {dimension_numbers = #tpu.dot_dimension_numbers<[1], [0], [0], [1], [0, 0, 1, 1], [], []>} : vector<16x32xbf16>, vector<32x32xbf16>, vector<16x32xf32> -> vector<16x32xf32>
    %7 = arith.addf %3, %6 : vector<16x32xf32>
    %c0_6 = arith.constant 0 : index
    %c0_7 = arith.constant 0 : index
    %8 = vector.load %arg12[%c0_6, %c0_7] : memref<16x32xf32, #tpu.memory_space<vmem>>, vector<16x32xf32>
    tpu.vector_store %arg12[%c0_6, %c0_7], %7 {strides = array<i32>} : memref<16x32xf32, #tpu.memory_space<vmem>>, vector<16x32xf32>,
    %c0_8 = arith.constant 0 : index
    %c0_9 = arith.constant 0 : index
    %9 = vector.load %arg13[%c0_8, %c0_9] : memref<16x32xf32, #tpu.memory_space<vmem>>, vector<16x32xf32>
    %c0_10 = arith.constant 0 : index
    %c0_11 = arith.constant 0 : index
    %10 = vector.load %arg4[%c0_10, %c0_11] : memref<16x32xbf16, #tpu.memory_space<vmem>>, vector<16x32xbf16>
    %c0_12 = arith.constant 0 : index
    %c0_13 = arith.constant 0 : index
    %11 = vector.load %arg7[%c0_12, %c0_13] : memref<32x32xbf16, #tpu.memory_space<vmem>>, vector<32x32xbf16>
    %cst_14 = arith.constant dense<0.000000e+00> : vector<16x32xf32>
    %12 = tpu.matmul %10, %11, %cst_14 {dimension_numbers = #tpu.dot_dimension_numbers<[1], [0], [0], [1], [0, 0, 1, 1], [], []>} : vector<16x32xbf16>, vector<32x32xbf16>, vector<16x32xf32> -> vector<16x32xf32>
    %13 = arith.addf %9, %12 : vector<16x32xf32>
    %c0_15 = arith.constant 0 : index
    %c0_16 = arith.constant 0 : index
    %14 = vector.load %arg13[%c0_15, %c0_16] : memref<16x32xf32, #tpu.memory_space<vmem>>, vector<16x32xf32>
    tpu.vector_store %arg13[%c0_15, %c0_16], %13 {strides = array<i32>} : memref<16x32xf32, #tpu.memory_space<vmem>>, vector<16x32xf32>,
    %c0_17 = arith.constant 0 : index
    %c0_18 = arith.constant 0 : index
    %15 = vector.load %arg14[%c0_17, %c0_18] : memref<16x32xf32, #tpu.memory_space<vmem>>, vector<16x32xf32>
    %c0_19 = arith.constant 0 : index
    %c0_20 = arith.constant 0 : index
    %16 = vector.load %arg5[%c0_19, %c0_20] : memref<16x32xbf16, #tpu.memory_space<vmem>>, vector<16x32xbf16>
    %c0_21 = arith.constant 0 : index
    %c0_22 = arith.constant 0 : index
    %17 = vector.load %arg8[%c0_21, %c0_22] : memref<32x32xbf16, #tpu.memory_space<vmem>>, vector<32x32xbf16>
    %cst_23 = arith.constant dense<0.000000e+00> : vector<16x32xf32>
    %18 = tpu.matmul %16, %17, %cst_23 {dimension_numbers = #tpu.dot_dimension_numbers<[1], [0], [0], [1], [0, 0, 1, 1], [], []>} : vector<16x32xbf16>, vector<32x32xbf16>, vector<16x32xf32> -> vector<16x32xf32>
    %19 = arith.addf %15, %18 : vector<16x32xf32>
    %c0_24 = arith.constant 0 : index
    %c0_25 = arith.constant 0 : index
    %20 = vector.load %arg14[%c0_24, %c0_25] : memref<16x32xf32, #tpu.memory_space<vmem>>, vector<16x32xf32>
    tpu.vector_store %arg14[%c0_24, %c0_25], %19 {strides = array<i32>} : memref<16x32xf32, #tpu.memory_space<vmem>>, vector<16x32xf32>,
    %c0_i32_26 = arith.constant 0 : i32
    %21 = arith.cmpi eq, %arg2, %c0_i32_26 : i32
    %22 = arith.extui %21 : i1 to i32
    %c0_i32_27 = arith.constant 0 : i32
    %23 = arith.cmpi ne, %22, %c0_i32_27 : i32
    scf.if %23 {
      %c0_28 = arith.constant 0 : index
      %c0_29 = arith.constant 0 : index
      %24 = vector.load %arg12[%c0_28, %c0_29] : memref<16x32xf32, #tpu.memory_space<vmem>>, vector<16x32xf32>
      %25 = arith.truncf %24 : vector<16x32xf32> to vector<16x32xbf16>
      %c0_30 = arith.constant 0 : index
      %c0_31 = arith.constant 0 : index
      %26 = vector.load %arg9[%c0_30, %c0_31] : memref<16x32xbf16, #tpu.memory_space<vmem>>, vector<16x32xbf16>
      tpu.vector_store %arg9[%c0_30, %c0_31], %25 {strides = array<i32>} : memref<16x32xbf16, #tpu.memory_space<vmem>>, vector<16x32xbf16>,
      %c0_32 = arith.constant 0 : index
      %c0_33 = arith.constant 0 : index
      %27 = vector.load %arg13[%c0_32, %c0_33] : memref<16x32xf32, #tpu.memory_space<vmem>>, vector<16x32xf32>
      %28 = arith.truncf %27 : vector<16x32xf32> to vector<16x32xbf16>
      %c0_34 = arith.constant 0 : index
      %c0_35 = arith.constant 0 : index
      %29 = vector.load %arg10[%c0_34, %c0_35] : memref<16x32xbf16, #tpu.memory_space<vmem>>, vector<16x32xbf16>
      tpu.vector_store %arg10[%c0_34, %c0_35], %28 {strides = array<i32>} : memref<16x32xbf16, #tpu.memory_space<vmem>>, vector<16x32xbf16>,
      %c0_36 = arith.constant 0 : index
      %c0_37 = arith.constant 0 : index
      %30 = vector.load %arg14[%c0_36, %c0_37] : memref<16x32xf32, #tpu.memory_space<vmem>>, vector<16x32xf32>
      %31 = arith.truncf %30 : vector<16x32xf32> to vector<16x32xbf16>
      %c0_38 = arith.constant 0 : index
      %c0_39 = arith.constant 0 : index
      %32 = vector.load %arg11[%c0_38, %c0_39] : memref<16x32xbf16, #tpu.memory_space<vmem>>, vector<16x32xbf16>
      tpu.vector_store %arg11[%c0_38, %c0_39], %31 {strides = array<i32>} : memref<16x32xbf16, #tpu.memory_space<vmem>>, vector<16x32xbf16>,
    } else {
    }
    return
  }
  func.func @transform_0(%arg0: i32, %arg1: i32, %arg2: i32) -> (i32, i32) {
    %c0_i32 = arith.constant 0 : i32
    return %arg0, %arg2 : i32, i32
  }
  func.func @transform_1(%arg0: i32, %arg1: i32, %arg2: i32) -> (i32, i32) {
    %c0_i32 = arith.constant 0 : i32
    return %arg0, %arg2 : i32, i32
  }
  func.func @transform_2(%arg0: i32, %arg1: i32, %arg2: i32) -> (i32, i32) {
    %c0_i32 = arith.constant 0 : i32
    return %arg0, %arg2 : i32, i32
  }
  func.func @transform_3(%arg0: i32, %arg1: i32, %arg2: i32) -> (i32, i32) {
    %c0_i32 = arith.constant 0 : i32
    return %arg2, %arg1 : i32, i32
  }
  func.func @transform_4(%arg0: i32, %arg1: i32, %arg2: i32) -> (i32, i32) {
    %c0_i32 = arith.constant 0 : i32
    return %arg2, %arg1 : i32, i32
  }
  func.func @transform_5(%arg0: i32, %arg1: i32, %arg2: i32) -> (i32, i32) {
    %c0_i32 = arith.constant 0 : i32
    return %arg2, %arg1 : i32, i32
  }
  func.func @transform_6(%arg0: i32, %arg1: i32, %arg2: i32) -> (i32, i32) {
    %c0_i32 = arith.constant 0 : i32
    return %arg0, %arg1 : i32, i32
  }
  func.func @transform_7(%arg0: i32, %arg1: i32, %arg2: i32) -> (i32, i32) {
    %c0_i32 = arith.constant 0 : i32
    return %arg0, %arg1 : i32, i32
  }
  func.func @transform_8(%arg0: i32, %arg1: i32, %arg2: i32) -> (i32, i32) {
    %c0_i32 = arith.constant 0 : i32
    return %arg0, %arg1 : i32, i32
  }
}

</mosaic_0001>

<bundles_post_ra>
// kernel: tpu_custom_call.1
= control target key start
LH: loop header
LB: loop body
LE: loop exit
PB: predicated region body
PF: predicated region fallthrough
CT: control target
= control target key end

     0   :  { %14 = vsyncpa [#allocation6], 0  ;;  %s840_s0 = inlined_call_operand.hbm [shape: bf16[16,32], index: 0, kind: input, shape index: {}]   ;;  %s841_s1 = inlined_call_operand.hbm [shape: bf16[16,32], index: 1, kind: input, shape index: {}]   ;;  %s842_s2 = inlined_call_operand.hbm [shape: bf16[16,32], index: 2, kind: input, shape index: {}]   ;;  %s843_s3 = inlined_call_operand.hbm [shape: bf16[32,32], index: 3, kind: input, shape index: {}]   ;;  %s844_s4 = inlined_call_operand.hbm [shape: bf16[32,32], index: 4, kind: input, shape index: {}]   ;;  %s845_s5 = inlined_call_operand.hbm [shape: bf16[32,32], index: 5, kind: input, shape index: {}]   ;;  %s846_s6 = inlined_call_operand.hbm [shape: bf16[16,32], index: 6, kind: output, shape index: {0}]   ;;  %s847_s7 = inlined_call_operand.hbm [shape: bf16[16,32], index: 7, kind: output, shape index: {1}]   ;;  %s848_s8 = inlined_call_operand.hbm [shape: bf16[16,32], index: 8, kind: output, shape index: {2}]  }
   0x1   :  { %15 = vsyncpa [#allocation9], 0 }
   0x2   :  { %16 = vsyncpa [#allocation12], 0 }
   0x3   :  { %17 = vsyncpa [#allocation15], 0 }
   0x4   :  { %18 = vsyncpa [#allocation7], 0 }
   0x5   :  { %19 = vsyncpa [#allocation18], 0  ;;  %s704_s27 = smov [#allocation8]   ;;  %s705_s29 = smov [#allocation11]  }
   0x6   :  { %s37_s28 = sshll.u32 %s704_s27, 4  ;;  %s61_s30 = sshll.u32 %s705_s29, 4  ;;  %s38_s28 = int_to_ptr.vmem [resolvable:$true] %s37_s28  ;;  %s62_s30 = int_to_ptr.vmem [resolvable:$true] %s61_s30 }
   0x7   :  { %s520_s9 = scalar_lea.vmem %s38_s28, 128  ;;  %p525_p1 = scmp.lt.s32.totalorder %s38_s28, %s38_s28 }
   0x8   :  { %p521_p0 = scmp.ne.s32.totalorder %s38_s28, %s520_s9  ;;  %p526_p2 = scmp.lt.s32.totalorder %s520_s9, %s520_s9 }
   0xa   :  { %p527_p3 = por %p526_p2, %p525_p1 }
   0xc   :  { %p528_p4 = pnand %p527_p3, %p521_p0 }
   0xe   :  { %531 = shalt.err (!%p528_p4)
}
   0xf   :  { %s706_s10 = smov 64   ;;  %s707_s11 = smov 4  }
  0x10   :  { %43 = dma.hbm_to_vmem [thread:$0]  %s841_s1, 128, %s38_s28, [#allocation9], %s706_s10, %s706_s10, %s707_s11  }
  0x11   :  { %s540_s14 = scalar_lea.vmem %s62_s30, 256  ;;  %p545_p6 = scmp.lt.s32.totalorder %s62_s30, %s62_s30 }
  0x12   :  { %p541_p5 = scmp.ne.s32.totalorder %s62_s30, %s540_s14  ;;  %p546_p7 = scmp.lt.s32.totalorder %s540_s14, %s540_s14 }
  0x14   :  { %p547_p8 = por %p546_p7, %p545_p6 }
  0x16   :  { %p548_p9 = pnand %p547_p8, %p541_p5 }
  0x18   :  { %551 = shalt.err (!%p548_p9)
}
  0x19   :  { %67 = dma.hbm_to_vmem [thread:$0]  %s843_s3, 256, %s62_s30, [#allocation12], %s706_s10, %s706_s10, %s707_s11  }
  0x1a   :  { %s708_s17 = smov [#allocation5]   ;;  %s709_s19 = smov [#allocation10]  }
  0x1b   :  { %s25_s18 = sshll.u32 %s708_s17, 4  ;;  %s49_s20 = sshll.u32 %s709_s19, 4  ;;  %s26_s18 = int_to_ptr.vmem [resolvable:$true] %s25_s18  ;;  %s50_s20 = int_to_ptr.vmem [resolvable:$true] %s49_s20 }
  0x1c   :  { %s560_s1 = scalar_lea.vmem %s26_s18, 128  ;;  %p565_p11 = scmp.lt.s32.totalorder %s26_s18, %s26_s18 }
  0x1d   :  { %p561_p10 = scmp.ne.s32.totalorder %s26_s18, %s560_s1  ;;  %p566_p12 = scmp.lt.s32.totalorder %s560_s1, %s560_s1 }
  0x1f   :  { %p567_p13 = por %p566_p12, %p565_p11 }
  0x21   :  { %p568_p0 = pnand %p567_p13, %p561_p10 }
  0x23   :  { %571 = shalt.err (!%p568_p0)
}
  0x24   :  { %31 = dma.hbm_to_vmem [thread:$0]  %s840_s0, 128, %s26_s18, [#allocation6], %s706_s10, %s706_s10, %s707_s11  }
  0x25   :  { %s580_s3 = scalar_lea.vmem %s50_s20, 128  ;;  %p585_p2 = scmp.lt.s32.totalorder %s50_s20, %s50_s20 }
  0x26   :  { %p581_p1 = scmp.ne.s32.totalorder %s50_s20, %s580_s3  ;;  %p586_p3 = scmp.lt.s32.totalorder %s580_s3, %s580_s3 }
  0x28   :  { %p587_p4 = por %p586_p3, %p585_p2 }
  0x2a   :  { %p588_p5 = pnand %p587_p4, %p581_p1 }
  0x2c   :  { %591 = shalt.err (!%p588_p5)
}
  0x2d   :  { %55 = dma.hbm_to_vmem [thread:$0]  %s842_s2, 128, %s50_s20, [#allocation9], %s706_s10, %s706_s10, %s707_s11  }
  0x2e   :  { %s710_s25 = smov [#allocation13]   ;;  %s711_s27 = smov [#allocation14]  }
  0x2f   :  { %s73_s26 = sshll.u32 %s710_s25, 4  ;;  %s85_s28 = sshll.u32 %s711_s27, 4  ;;  %s74_s26 = int_to_ptr.vmem [resolvable:$true] %s73_s26  ;;  %s86_s28 = int_to_ptr.vmem [resolvable:$true] %s85_s28 }
  0x30   :  { %s600_s0 = scalar_lea.vmem %s74_s26, 256  ;;  %p605_p7 = scmp.lt.s32.totalorder %s74_s26, %s74_s26 }
  0x31   :  { %p601_p6 = scmp.ne.s32.totalorder %s74_s26, %s600_s0  ;;  %p606_p8 = scmp.lt.s32.totalorder %s600_s0, %s600_s0 }
  0x33   :  { %p607_p9 = por %p606_p8, %p605_p7 }
  0x35   :  { %p608_p10 = pnand %p607_p9, %p601_p6 }
  0x37   :  { %611 = shalt.err (!%p608_p10)
}
  0x38   :  { %79 = dma.hbm_to_vmem [thread:$0]  %s844_s4, 256, %s74_s26, [#allocation12], %s706_s10, %s706_s10, %s707_s11  }
  0x39   :  { %s620_s2 = scalar_lea.vmem %s86_s28, 256  ;;  %p625_p12 = scmp.lt.s32.totalorder %s86_s28, %s86_s28 }
  0x3a   :  { %p621_p11 = scmp.ne.s32.totalorder %s86_s28, %s620_s2  ;;  %p626_p13 = scmp.lt.s32.totalorder %s620_s2, %s620_s2 }
  0x3c   :  { %p627_p0 = por %p626_p13, %p625_p12 }
  0x3e   :  { %p628_p1 = pnand %p627_p0, %p621_p11 }
  0x40   :  { %631 = shalt.err (!%p628_p1)
}
  0x41   :  { %91 = dma.hbm_to_vmem [thread:$0]  %s845_s5, 256, %s86_s28, [#allocation15], %s706_s10, %s706_s10, %s707_s11  }
  0x42   :  { %692 = dma.done.wait [#allocation6], 128  }
  0x43   :  { %693 = vsyncadd [#allocation6], 4294967168 }
  0x44   :  { %694 = dma.done.wait [#allocation9], 256  }
  0x45   :  { %695 = vsyncadd [#allocation9], 4294967040 }
  0x46   :  { %696 = dma.done.wait [#allocation12], 512  }
  0x47   :  { %697 = vsyncadd [#allocation12], 4294966784 }
  0x48   :  { %698 = dma.done.wait [#allocation15], 256  }
  0x49   :  { %699 = vsyncadd [#allocation15], 4294967040  ;;  %vm115_vm0 = vcmask 261120   ;;  %v712_v0 = vmov 0.0   ;;  %vm713_vm1 = vmmov 0   ;;  %v503_v1 = vld [vmem:[#allocation11 + $0x8] sm:$0xff]  }
  0x4a   :  { %466 = vmatprep.subr.bf16.mxu0 %v712_v0  ;;  %474 = vmatprep.subr.bf16.mxu1 %v712_v0  ;;  %116 = vst.msk [vmem:[#allocation2] sm:$0xff] %vm115_vm0, %v712_v0  ;;  %117 = vst.msk [vmem:[#allocation2 + $0x8] sm:$0xff] %vm115_vm0, %v712_v0  ;;  %v504_v2 = vld [vmem:[#allocation13 + $0x8] sm:$0xff]   ;;  %v505_v3 = vld [vmem:[#allocation11] sm:$0xff]   ;;  %vm355_vm2 = vcmask 257024   ;;  %s714_s4 = smov [#allocation16]  }
  0x4b   :  { %118 = vst.msk [vmem:[#allocation3] sm:$0xff] %vm115_vm0, %v712_v0  ;;  %119 = vst.msk [vmem:[#allocation3 + $0x8] sm:$0xff] %vm115_vm0, %v712_v0  ;;  %470 = vmatprep.mubr.msk.bf16.mxu0 %vm713_vm1, %v712_v0  ;;  %478 = vmatprep.mubr.msk.bf16.mxu1 %vm713_vm1, %v712_v0  ;;  %v506_v4 = vld [vmem:[#allocation13] sm:$0xff]   ;;  %v507_v5 = vld [vmem:[#allocation5] sm:$0xff]   ;;  %s387_s5 = sshll.u32 %s714_s4, 4  ;;  %s715_s13 = smov [#allocation17]   ;;  %s388_s5 = int_to_ptr.vmem [resolvable:$true] %s387_s5 }
  0x4c   :  { %120 = vst.msk [vmem:[#allocation4] sm:$0xff] %vm115_vm0, %v712_v0  ;;  %121 = vst.msk [vmem:[#allocation4 + $0x8] sm:$0xff] %vm115_vm0, %v712_v0  ;;  %467 = vmatpush3.bf16.msra.mxu0 %v503_v1  ;;  %475 = vmatpush3.bf16.msra.mxu1 %v504_v2  ;;  %v508_v6 = vld [vmem:[#allocation14 + $0x8] sm:$0xff]   ;;  %v509_v7 = vld [vmem:[#allocation8] sm:$0xff]   ;;  %s399_s14 = sshll.u32 %s715_s13, 4  ;;  %s632_s15 = scalar_lea.vmem %s388_s5, 128  ;;  %s400_s14 = int_to_ptr.vmem [resolvable:$true] %s399_s14 }
  0x4d   :  { %468 = vmatprep.subr.bf16.mxu0 %v712_v0  ;;  %476 = vmatprep.subr.bf16.mxu1 %v712_v0  ;;  %v510_v8 = vld [vmem:[#allocation14] sm:$0xff]   ;;  %v511_v9 = vld [vmem:[#allocation10] sm:$0xff]   ;;  %p633_p2 = scmp.ne.s32.totalorder %s388_s5, %s632_s15  ;;  %p637_p3 = scmp.lt.s32.totalorder %s388_s5, %s388_s5 }
  0x4e   :  { %p638_p4 = scmp.lt.s32.totalorder %s632_s15, %s632_s15 }
  0x50   :  { %469 = vmatpush3.bf16.msra.mxu0 %v505_v3  ;;  %477 = vmatpush3.bf16.msra.mxu1 %v506_v4  ;;  %p639_p5 = por %p638_p4, %p637_p3 }
  0x51   :  { %482 = vmatprep.subr.bf16.mxu0 %v712_v0  ;;  %v122_v10 = vld [vmem:[#allocation2] sm:$0xff]  ;;  %v123_v17 = vld [vmem:[#allocation2 + $0x8] sm:$0xff] }
  0x52   :  { %v196_v11 = vld [vmem:[#allocation3] sm:$0xff]  ;;  %v197_v19 = vld [vmem:[#allocation3 + $0x8] sm:$0xff]  ;;  %p640_p6 = pnand %p639_p5, %p633_p2 }
  0x53   :  { %471 = vmatmul.mubr.msk.bf16.vlgmr.msra.gmra.mxu0 %vm115_vm0, %v507_v5  ;;  %479 = vmatmul.mubr.msk.bf16.vlgmr.msra.gmra.mxu1 %vm115_vm0, %v509_v7  ;;  %v269_v25 = vld [vmem:[#allocation4] sm:$0xff]  ;;  %v270_v30 = vld [vmem:[#allocation4 + $0x8] sm:$0xff] }
  0x54   :  { %483 = vmatpush3.bf16.msra.mxu0 %v508_v6  ;;  %486 = vmatprep.mubr.msk.bf16.mxu0 %vm713_vm1, %v712_v0 }
  0x55   :  { %484 = vmatprep.subr.bf16.mxu0 %v712_v0 }
  0x58   :  { %485 = vmatpush3.bf16.msra.mxu0 %v510_v8 }
  0x5b   :  { %487 = vmatmul.mubr.msk.bf16.vlgmr.msra.gmra.mxu0 %vm115_vm0, %v511_v9 }
 0x113   :  { %v185_v12 = vpop.f32.mrf.mxu0  ;;  %v258_v14 = vpop.f32.mrf.mxu1 }
 0x114   :  { %v192_v13 = vadd.f32 %v185_v12, %v122_v10  ;;  %v265_v16 = vadd.f32 %v258_v14, %v196_v11 }
 0x115   :  { %v472_v15 = vpop.f32.mrf.mxu0  ;;  %v480_v18 = vpop.f32.mrf.mxu1 }
 0x116   :  { %194 = vst.msk [vmem:[#allocation2] sm:$0xff] %vm115_vm0, %v192_v13  ;;  %267 = vst.msk [vmem:[#allocation3] sm:$0xff] %vm115_vm0, %v265_v16 }
 0x117   :  { %v188_v20 = vpop.f32.mrf.mxu0  ;;  %v261_v22 = vpop.f32.mrf.mxu1 }
 0x118   :  { %v193_v21 = vadd.f32 %v188_v20, %v123_v17  ;;  %v266_v24 = vadd.f32 %v261_v22, %v197_v19 }
 0x119   :  { %v473_v23 = vpop.f32.mrf.mxu0  ;;  %v481_v26 = vpop.f32.mrf.mxu1 }
 0x11a   :  { %195 = vst.msk [vmem:[#allocation2 + $0x8] sm:$0xff] %vm115_vm0, %v193_v21  ;;  %268 = vst.msk [vmem:[#allocation3 + $0x8] sm:$0xff] %vm115_vm0, %v266_v24 }
 0x11b   :  { %v331_v27 = vpop.f32.mrf.mxu0 }
 0x11c   :  { %v338_v28 = vadd.f32 %v331_v27, %v269_v25 }
 0x11d   :  { %v488_v29 = vpop.f32.mrf.mxu0  ;;  %v345_v31 = vld [vmem:[#allocation2] sm:$0xff]  ;;  %v358_v32 = vld [vmem:[#allocation3] sm:$0xff] }
 0x11e   :  { %340 = vst.msk [vmem:[#allocation4] sm:$0xff] %vm115_vm0, %v338_v28  ;;  %v451_v33 = vpack.c.bf16 %v345_v31, %v345_v31  ;;  %v453_v35 = vpack.c.bf16 %v358_v32, %v358_v32 }
 0x11f   :  { %v334_v34 = vpop.f32.mrf.mxu0 }
 0x120   :  { %v339_v36 = vadd.f32 %v334_v34, %v270_v30  ;;  %356 = vst.msk [vmem:[#allocation16] sm:$0xf] %vm355_vm2, %v451_v33  ;;  %368 = vst.msk [vmem:[#allocation17] sm:$0xf] %vm355_vm2, %v453_v35 }
 0x121   :  { %v489_v37 = vpop.f32.mrf.mxu0  ;;  %v346_v38 = vld [vmem:[#allocation2 + $0x8] sm:$0xff]  ;;  %v359_v39 = vld [vmem:[#allocation3 + $0x8] sm:$0xff] }
 0x122   :  { %341 = vst.msk [vmem:[#allocation4 + $0x8] sm:$0xff] %vm115_vm0, %v339_v36  ;;  %v452_v40 = vpack.c.bf16 %v346_v38, %v346_v38  ;;  %v454_v41 = vpack.c.bf16 %v359_v39, %v359_v39 }
 0x124   :  { %357 = vst.msk [vmem:[#allocation16 + $0x4] sm:$0xf] %vm355_vm2, %v452_v40  ;;  %369 = vst.msk [vmem:[#allocation17 + $0x4] sm:$0xf] %vm355_vm2, %v454_v41 }
 0x125   :  { %643 = shalt.err (!%p640_p6)
}
 0x126   :  { %393 = dma.vmem_to_hbm [thread:$0]  %s388_s5, 128, %s846_s6, [#allocation7], %s706_s10, %s706_s10, %s707_s11   ;;  %v370_v42 = vld [vmem:[#allocation4] sm:$0xff] }
 0x127   :  { %s652_s18 = scalar_lea.vmem %s400_s14, 128  ;;  %p657_p8 = scmp.lt.s32.totalorder %s400_s14, %s400_s14 }
 0x128   :  { %p653_p7 = scmp.ne.s32.totalorder %s400_s14, %s652_s18  ;;  %p658_p9 = scmp.lt.s32.totalorder %s652_s18, %s652_s18 }
 0x12a   :  { %p659_p10 = por %p658_p9, %p657_p8 }
 0x12c   :  { %p660_p11 = pnand %p659_p10, %p653_p7 }
 0x12e   :  { %663 = shalt.err (!%p660_p11)
}
 0x12f   :  { %405 = dma.vmem_to_hbm [thread:$0]  %s400_s14, 128, %s847_s7, [#allocation18], %s706_s10, %s706_s10, %s707_s11   ;;  %v455_v43 = vpack.c.bf16 %v370_v42, %v370_v42  ;;  %v371_v44 = vld [vmem:[#allocation4 + $0x8] sm:$0xff] }
 0x130   :  { %s716_s1 = smov [#allocation19]   ;;  %v456_v45 = vpack.c.bf16 %v371_v44, %v371_v44 }
 0x131   :  { %s411_s21 = sshll.u32 %s716_s1, 4  ;;  %380 = vst.msk [vmem:[#allocation19] sm:$0xf] %vm355_vm2, %v455_v43  ;;  %s412_s21 = int_to_ptr.vmem [resolvable:$true] %s411_s21 }
 0x132   :  { %381 = vst.msk [vmem:[#allocation19 + $0x4] sm:$0xf] %vm355_vm2, %v456_v45  ;;  %s672_s6 = scalar_lea.vmem %s412_s21, 128  ;;  %p677_p13 = scmp.lt.s32.totalorder %s412_s21, %s412_s21 }
 0x133   :  { %p673_p12 = scmp.ne.s32.totalorder %s412_s21, %s672_s6  ;;  %p678_p0 = scmp.lt.s32.totalorder %s672_s6, %s672_s6 }
 0x135   :  { %p679_p1 = por %p678_p0, %p677_p13 }
 0x137   :  { %p680_p2 = pnand %p679_p1, %p673_p12 }
 0x139   :  { %683 = shalt.err (!%p680_p2)
}
 0x13a   :  { %417 = dma.vmem_to_hbm [thread:$0]  %s412_s21, 128, %s848_s8, [#allocation18], %s706_s10, %s706_s10, %s707_s11  }
 0x13b   :  { %700 = dma.done.wait [#allocation7], 128  }
 0x13c   :  { %701 = vsyncadd [#allocation7], 4294967168 }
 0x13d   :  { %702 = dma.done.wait [#allocation18], 256  }
 0x13e   :  { %703 = vsyncadd [#allocation18], 4294967040 }
 0x13f   :  { %427 = vsyncpa [#allocation6], 1 }
 0x140   :  { %428 = vsyncpa [#allocation9], 1 }
 0x141   :  { %429 = vsyncpa [#allocation12], 1 }
 0x142   :  { %430 = vsyncpa [#allocation15], 1 }
 0x143   :  { %431 = vsyncpa [#allocation7], 1 }
 0x144   :  { %432 = vsyncpa [#allocation18], 1 }

</bundles_post_ra>
